<compile_context>
chip_gen: v7x
topology: tpu7x:2x2x1
jax: 0.10.0
libtpu: 0.0.40
codegen_flags: <defaults>
</compile_context>

<pallas_src>
import functools

import jax
import jax.numpy as jnp
from jax import lax
from jax.experimental import pallas as pl
from jax.experimental.pallas import tpu as pltpu


_IGNORE_INDEX = -100                      # PyTorch F.cross_entropy default
_WORKING_BUDGET_BYTES = 36 * 1024 * 1024  # per-tile working-set target
_VMEM_LIMIT_FLOOR = 32 * 1024 * 1024      # > v5e/v6e default scoped VMEM
_VMEM_LIMIT_CEIL = 48 * 1024 * 1024       # safe headroom under v7x 64 MiB physical


def _round_up(x, m):
    return ((x + m - 1) // m) * m


def _sublane_multiple(dtype):
    # native sublane tile per itemsize: f32 -> 8, bf16 -> 16, int8/fp8 -> 32
    return {4: 8, 2: 16, 1: 32}.get(jnp.dtype(dtype).itemsize, 8)


# ---------------------------------------------------------------------------
# Kernels
# ---------------------------------------------------------------------------

def _ce_cols_kernel(xT_ref, lw_ref, out_ref, *, n_rows, ignore_index):
    """Lane-dense path (C < 128): block is (C, tm) with samples on lanes."""
    c, tm = xT_ref.shape

    x = xT_ref[...].astype(jnp.float32)                       # (C, tm)
    shifted = x - jnp.max(x, axis=0, keepdims=True)           # (C, tm)
    lse_s = jnp.log(jnp.sum(jnp.exp(shifted), axis=0, keepdims=True))  # (1, tm)

    labels = lw_ref[0:1, :]                                    # (1, tm) int32
    w = pltpu.bitcast(lw_ref[1:2, :], jnp.float32)             # (1, tm) f32

    cls = lax.broadcasted_iota(jnp.int32, (c, tm), 0)
    picked_s = jnp.sum(jnp.where(cls == labels, shifted, 0.0),
                       axis=0, keepdims=True)                  # (1, tm)

    per = lse_s - picked_s                                     # -log_softmax[label]
    keep = labels != ignore_index
    # Tail mask on the per-sample vector only (static: only when grid ragged).
    if n_rows % tm != 0:
        col = pl.program_id(0) * tm + lax.broadcasted_iota(jnp.int32, (1, tm), 1)
        keep = jnp.logical_and(keep, col < n_rows)
    contrib = jnp.where(keep, per * w, 0.0)                    # kills pad-row NaNs too

    out_ref[...] = jnp.sum(contrib, keepdims=True)[None]       # (1, 1, 1)


def _ce_rows_kernel(x_ref, lw_ref, out_ref, *, n_rows, ignore_index, use_mxu):
    """Row-major path (C >= 128): block is (tm, C) with classes on lanes."""
    tm, c = x_ref.shape

    x = x_ref[...].astype(jnp.float32)                         # (tm, C)
    shifted = x - jnp.max(x, axis=-1, keepdims=True)
    e = jnp.exp(shifted)
    if use_mxu:
        # Route the class-axis sum through the otherwise idle MXU.
        ssum = jnp.dot(e, jnp.ones((c, 1), jnp.float32),
                       preferred_element_type=jnp.float32)     # (tm, 1)
    else:
        ssum = jnp.sum(e, axis=-1, keepdims=True)
    lse_s = jnp.log(ssum)                                      # (tm, 1)

    labels = lw_ref[:, 0:1]                                    # (tm, 1) int32
    w = pltpu.bitcast(lw_ref[:, 1:2], jnp.float32)             # (tm, 1) f32

    col = lax.broadcasted_iota(jnp.int32, (tm, c), 1)
    picked_s = jnp.sum(jnp.where(col == labels, shifted, 0.0),
                       axis=-1, keepdims=True)                 # (tm, 1)

    per = lse_s - picked_s
    keep = labels != ignore_index
    if n_rows % tm != 0:
        row = pl.program_id(0) * tm + lax.broadcasted_iota(jnp.int32, (tm, 1), 0)
        keep = jnp.logical_and(keep, row < n_rows)
    contrib = jnp.where(keep, per * w, 0.0)

    out_ref[...] = jnp.sum(contrib, keepdims=True)[None]       # (1, 1, 1)


# ---------------------------------------------------------------------------
# Wrapper: per-tile partial sums of weight[i] * CE(cls_score[i], label[i])
# ---------------------------------------------------------------------------

def _weighted_ce_partial_sums(cls_score, label, weight, *, tile_override=None,
                              ignore_index=_IGNORE_INDEX):
    """Returns (num_tiles, 1, 1) float32 partial sums; sum() gives the total."""
    n, c = cls_score.shape
    itemsize = jnp.dtype(cls_score.dtype).itemsize
    sub_in = _sublane_multiple(cls_score.dtype)

    # Pack label (int32) and weight (f32 bits) into one int32 side array.
    lab_i32 = label.reshape(n).astype(jnp.int32)
    w_bits = lax.bitcast_convert_type(weight.reshape(n).astype(jnp.float32),
                                      jnp.int32)

    use_cols = c < 128   # lane-dense transposed path for small class counts

    if use_cols:
        x = jnp.transpose(cls_score)               # (C, N): samples on lanes
        lw = jnp.stack([lab_i32, w_bits], axis=0)  # (2, N) int32

        # Per-sample-column working-set bytes:
        #   double-buffered input block + double-buffered (2,tm) side block
        #   (padded to 8 sublanes) + ~3 f32 (C,tm) temporaries.
        per_col = (2 * _round_up(c, sub_in) * itemsize
                   + 2 * 8 * 4
                   + 3 * _round_up(c, 8) * 4)
        tm = _WORKING_BUDGET_BYTES // per_col
        tm = max(128, (tm // 128) * 128)
        tm = min(tm, 128 * 1024)
        if tile_override is not None:
            tm = max(128, (int(tile_override) // 128) * 128)
        if n >= 4 * 128:
            # >=4 tiles so the "parallel" axis shards across v7x's two TCs.
            tm = min(tm, _round_up(pl.cdiv(n, 4), 128))
        if n <= tm:
            tm = n                                  # full-dim block (no /128 req.)
        num_tiles = pl.cdiv(n, tm)
        working = per_col * tm + (1 << 20)

        kernel = functools.partial(_ce_cols_kernel, n_rows=n,
                                   ignore_index=ignore_index)
        in_specs = [pl.BlockSpec((c, tm), lambda i: (0, i)),
                    pl.BlockSpec((2, tm), lambda i: (0, i))]
        operands = (x, lw)
    else:
        lw = jnp.stack([lab_i32, w_bits], axis=1)  # (N, 2) int32
        c_pad = _round_up(c, 128)
        # Per-row working-set bytes (side block lane-padded to 128 lanes).
        per_row = (2 * c_pad * itemsize
                   + 2 * 128 * 4
                   + 3 * c_pad * 4)
        tm = _WORKING_BUDGET_BYTES // per_row
        tm = max(sub_in, (tm // sub_in) * sub_in)
        tm = min(tm, 8192)
        if tile_override is not None:
            tm = max(sub_in, (int(tile_override) // sub_in) * sub_in)
        if n >= 4 * sub_in:
            tm = min(tm, _round_up(pl.cdiv(n, 4), sub_in))
        if n <= tm:
            tm = n
        num_tiles = pl.cdiv(n, tm)
        working = per_row * tm + _round_up(c, 8) * 128 * 4 + (1 << 20)

        kernel = functools.partial(_ce_rows_kernel, n_rows=n,
                                   ignore_index=ignore_index, use_mxu=c >= 128)
        in_specs = [pl.BlockSpec((tm, c), lambda i: (i, 0)),
                    pl.BlockSpec((tm, 2), lambda i: (i, 0))]
        operands = (cls_score, lw)

    vmem_limit = int(min(_VMEM_LIMIT_CEIL,
                         max(_VMEM_LIMIT_FLOOR, working + (8 << 20))))

    return pl.pallas_call(
        kernel,
        out_shape=jax.ShapeDtypeStruct((num_tiles, 1, 1), jnp.float32),
        grid_spec=pltpu.PrefetchScalarGridSpec(
            num_scalar_prefetch=0,
            grid=(num_tiles,),
            in_specs=in_specs,
            out_specs=pl.BlockSpec((1, 1, 1), lambda i: (i, 0, 0)),
        ),
        compiler_params=pltpu.CompilerParams(
            dimension_semantics=("parallel",),
            vmem_limit_bytes=vmem_limit,
        ),
    )(*operands)


# ---------------------------------------------------------------------------
# Module wrapper
# ---------------------------------------------------------------------------

class CustomCrossEntropyLossPallas:
    """JAX/Pallas equivalent of CustomCrossEntropyLoss (cross_entropy path)."""

    def __init__(self, use_sigmoid=False, use_mask=False, reduction="mean",
                 loss_weight=1.0, tile_override=None):
        # TODO(synk): use_sigmoid (binary_cross_entropy) and use_mask
        # (mask_cross_entropy) branches are not implemented.
        assert not use_sigmoid and not use_mask, (
            "Only the default cross_entropy path is implemented")
        self.reduction = reduction
        self.loss_weight = loss_weight
        self.tile_override = tile_override

    def __call__(self, cls_score, label, weight=None, avg_factor=None,
                 reduction_override=None):
        assert reduction_override in (None, "none", "mean", "sum")
        reduction = reduction_override if reduction_override else self.reduction
        n = cls_score.shape[0]

        w = jnp.ones((n,), jnp.float32) if weight is None else weight
        partials = _weighted_ce_partial_sums(cls_score, label, w,
                                             tile_override=self.tile_override)
        wsum = jnp.sum(partials)            # tiny (num_tiles,) reduce outside

        if avg_factor is None:
            if reduction == "mean":
                loss = wsum / jnp.float32(n)
            elif reduction == "sum":
                loss = wsum
            else:
                # TODO(synk): reduction='none' needs a per-row-output kernel.
                raise NotImplementedError("reduction='none' is not supported")
        else:
            if reduction != "mean":
                raise ValueError('avg_factor can not be used with reduction="sum"')
            loss = wsum / jnp.float32(avg_factor)

        return self.loss_weight * loss


# ---------------------------------------------------------------------------
# Pure-JAX reference + demo
# ---------------------------------------------------------------------------

def _reference(cls_score, label, weight, avg_factor, loss_weight=1.0,
               reduction="mean"):
    logits = cls_score.astype(jnp.float32)
    logp = jax.nn.log_softmax(logits, axis=-1)
    lab = label.astype(jnp.int32)
    safe = jnp.clip(lab, 0, logits.shape[-1] - 1)
    per = -jnp.take_along_axis(logp, safe[:, None], axis=-1)[:, 0]
    per = jnp.where(lab == _IGNORE_INDEX, 0.0, per)
    if weight is not None:
        per = per * weight.astype(jnp.float32)
    if avg_factor is None:
        red = per.mean() if reduction == "mean" else per.sum()
    else:
        red = per.sum() / avg_factor
    return loss_weight * red


if __name__ == "__main__":
    key = jax.random.PRNGKey(0)
    k1, k2, k3, k4, k5, k6, k7, k8 = jax.random.split(key, 8)

    loss_mod = CustomCrossEntropyLossPallas(reduction="mean", loss_weight=1.0)

    # 1) RPN-cls-head-like shape: 16 anchors, 5 classes (lane-dense path).
    N, C = 16, 5
    cls_score = jax.random.normal(k1, (N, C), jnp.float32)
    label = jax.random.randint(k2, (N,), 0, C, dtype=jnp.int32)
    weight = jax.random.uniform(k3, (N,), jnp.float32)

    out = jax.block_until_ready(loss_mod(cls_score, label, weight, 12.0))
    ref = _reference(cls_score, label, weight, 12.0)
    assert jnp.allclose(out, ref, rtol=1e-5, atol=1e-5), (out, ref)

    out2 = jax.block_until_ready(loss_mod(cls_score, label, weight, None))
    ref2 = _reference(cls_score, label, weight, None)
    assert jnp.allclose(out2, ref2, rtol=1e-5, atol=1e-5), (out2, ref2)

    # 2) ignore_index=-100 rows contribute zero (PyTorch F.cross_entropy default).
    label_ig = label.at[0].set(-100)
    out3 = jax.block_until_ready(loss_mod(cls_score, label_ig, weight, None))
    ref3 = _reference(cls_score, label_ig, weight, None)
    assert jnp.allclose(out3, ref3, rtol=1e-5, atol=1e-5), (out3, ref3)

    # 3) bf16 input, no weight (in-kernel f32 cast only, no host-side pad/cast).
    N2, C2 = 50, 7
    x2 = jax.random.normal(k4, (N2, C2), jnp.float32).astype(jnp.bfloat16)
    lab2 = jax.random.randint(k5, (N2,), 0, C2, dtype=jnp.int32)
    out4 = jax.block_until_ready(loss_mod(x2, lab2, None, None))
    ref4 = _reference(x2, lab2, None, None)
    assert jnp.allclose(out4, ref4, rtol=2e-3, atol=2e-3), (out4, ref4)

    # 4) multi-tile lane-dense path with a ragged tail (forced small tile).
    N3, C3 = 300, 5
    x3 = jax.random.normal(k6, (N3, C3), jnp.float32)
    lab3 = jax.random.randint(k7, (N3,), 0, C3, dtype=jnp.int32)
    w3 = jax.random.uniform(k8, (N3,), jnp.float32)
    loss_small_tiles = CustomCrossEntropyLossPallas(tile_override=128)
    out5 = jax.block_until_ready(loss_small_tiles(x3, lab3, w3, None))
    ref5 = _reference(x3, lab3, w3, None)
    assert jnp.allclose(out5, ref5, rtol=1e-5, atol=1e-5), (out5, ref5)

    # 5) wide-class row path (C >= 128): multi-tile, ragged tail, MXU class sum.
    kA, kB, kC = jax.random.split(k8, 3)
    N4, C4 = 60, 128
    x4 = jax.random.normal(kA, (N4, C4), jnp.float32)
    lab4 = jax.random.randint(kB, (N4,), 0, C4, dtype=jnp.int32)
    w4 = jax.random.uniform(kC, (N4,), jnp.float32)
    out6 = jax.block_until_ready(loss_mod(x4, lab4, w4, 40.0))
    ref6 = _reference(x4, lab4, w4, 40.0)
    assert jnp.allclose(out6, ref6, rtol=1e-5, atol=1e-5), (out6, ref6)

    print("KERNEL_OK")
</pallas_src>

<mosaic_0001>
module attributes {stable_mosaic.version = 11 : i64} {
  func.func @_ce_cols_kernel(%arg0: i32, %arg1: memref<5x16xf32, #tpu.memory_space<vmem>>, %arg2: memref<2x16xi32, #tpu.memory_space<vmem>>, %arg3: memref<1x1x1xf32, #tpu.memory_space<vmem>>) attributes {dimension_semantics = [#tpu.dimension_semantics<parallel>], iteration_bounds = array<i64: 1>, scalar_prefetch = 0 : i64, scratch_operands = 0 : i64, tpu.core_type = #tpu.core_type<tc>, window_params = [{transform_indices = @transform_0, window_bounds = array<i64: 5, 16>}, {transform_indices = @transform_1, window_bounds = array<i64: 2, 16>}, {transform_indices = @transform_2, window_bounds = array<i64: 1, 1, 1>}]} {
    %c0 = arith.constant 0 : index
    %c0_0 = arith.constant 0 : index
    %0 = vector.load %arg1[%c0, %c0_0] : memref<5x16xf32, #tpu.memory_space<vmem>>, vector<5x16xf32>
    %cst = arith.constant dense<0xFF800000> : vector<16xf32>
    %1 = vector.multi_reduction <maximumf>, %0, %cst [0] : vector<5x16xf32> to vector<16xf32>
    %2 = vector.shape_cast %1 : vector<16xf32> to vector<1x16xf32>
    %3 = vector.broadcast %2 : vector<1x16xf32> to vector<5x16xf32>
    %4 = arith.subf %0, %3 : vector<5x16xf32>
    %5 = math.exp %4 : vector<5x16xf32>
    %cst_1 = arith.constant dense<0.000000e+00> : vector<16xf32>
    %6 = vector.multi_reduction <add>, %5, %cst_1 [0] : vector<5x16xf32> to vector<16xf32>
    %7 = vector.shape_cast %6 : vector<16xf32> to vector<1x16xf32>
    %8 = math.log %7 : vector<1x16xf32>
    %c0_2 = arith.constant 0 : index
    %c0_3 = arith.constant 0 : index
    %9 = vector.load %arg2[%c0_2, %c0_3] : memref<2x16xi32, #tpu.memory_space<vmem>>, vector<1x16xi32>
    %c1 = arith.constant 1 : index
    %c0_4 = arith.constant 0 : index
    %10 = vector.load %arg2[%c1, %c0_4] : memref<2x16xi32, #tpu.memory_space<vmem>>, vector<1x16xi32>
    %11 = tpu.bitcast %10 : vector<1x16xi32> -> vector<1x16xf32>
    %12 = tpu.iota {dimensions = array<i32: 0>} : vector<5x16xi32>
    %13 = vector.broadcast %9 : vector<1x16xi32> to vector<5x16xi32>
    %14 = arith.cmpi eq, %12, %13 : vector<5x16xi32>
    %cst_5 = arith.constant 0.000000e+00 : f32
    %15 = vector.broadcast %cst_5 : f32 to vector<5x16xf32>
    %16 = arith.select %14, %4, %15 : vector<5x16xi1>, vector<5x16xf32>
    %cst_6 = arith.constant dense<0.000000e+00> : vector<16xf32>
    %17 = vector.multi_reduction <add>, %16, %cst_6 [0] : vector<5x16xf32> to vector<16xf32>
    %18 = vector.shape_cast %17 : vector<16xf32> to vector<1x16xf32>
    %19 = arith.subf %8, %18 : vector<1x16xf32>
    %c-100_i32 = arith.constant -100 : i32
    %20 = vector.broadcast %c-100_i32 : i32 to vector<1x16xi32>
    %21 = arith.cmpi ne, %9, %20 : vector<1x16xi32>
    %22 = arith.mulf %19, %11 : vector<1x16xf32>
    %cst_7 = arith.constant 0.000000e+00 : f32
    %23 = vector.broadcast %cst_7 : f32 to vector<1x16xf32>
    %24 = arith.select %21, %22, %23 : vector<1x16xi1>, vector<1x16xf32>
    %25 = vector.shape_cast %24 : vector<1x16xf32> to vector<1x1x16xf32>
    %cst_8 = arith.constant dense<0.000000e+00> : vector<1xf32>
    %26 = vector.multi_reduction <add>, %25, %cst_8 [1, 2] : vector<1x1x16xf32> to vector<1xf32>
    %27 = vector.shape_cast %26 : vector<1xf32> to vector<1x1x1xf32>
    %28 = vector.extract %27[0, 0, 0] : f32 from vector<1x1x1xf32>
    %29 = vector.broadcast %28 : f32 to vector<1x1xf32>
    %30 = vector.shape_cast %29 : vector<1x1xf32> to vector<1x1x1xf32>
    %c0_9 = arith.constant 0 : index
    %c0_10 = arith.constant 0 : index
    %c0_11 = arith.constant 0 : index
    %31 = vector.load %arg3[%c0_9, %c0_10, %c0_11] : memref<1x1x1xf32, #tpu.memory_space<vmem>>, vector<1x1x1xf32>
    tpu.vector_store %arg3[%c0_9, %c0_10, %c0_11], %30 {strides = array<i32>} : memref<1x1x1xf32, #tpu.memory_space<vmem>>, vector<1x1x1xf32>,
    return
  }
  func.func @transform_0(%arg0: i32) -> (i32, i32) {
    %c0_i32 = arith.constant 0 : i32
    %c0_i32_0 = arith.constant 0 : i32
    return %c0_i32, %arg0 : i32, i32
  }
  func.func @transform_1(%arg0: i32) -> (i32, i32) {
    %c0_i32 = arith.constant 0 : i32
    %c0_i32_0 = arith.constant 0 : i32
    return %c0_i32, %arg0 : i32, i32
  }
  func.func @transform_2(%arg0: i32) -> (i32, i32, i32) {
    %c0_i32 = arith.constant 0 : i32
    %c0_i32_0 = arith.constant 0 : i32
    %c0_i32_1 = arith.constant 0 : i32
    return %arg0, %c0_i32, %c0_i32_0 : i32, i32, i32
  }
}

</mosaic_0001>

<bundles_post_ra>
// kernel: tpu_custom_call.1
= control target key start
LH: loop header
LB: loop body
LE: loop exit
PB: predicated region body
PF: predicated region fallthrough
CT: control target
= control target key end

     0   :  { %7 = vsyncpa [#allocation3], 0  ;;  %s202_s0 = inlined_call_operand.hbm [shape: f32[5,16], index: 0, kind: input, shape index: {}]   ;;  %s203_s1 = inlined_call_operand.vmem [shape: s32[2,16], index: 1, kind: input, shape index: {}]   ;;  %s204_s2 = inlined_call_operand.hbm [shape: f32[1,1,1], index: 2, kind: output, shape index: {}]  }
   0x1   :  { %8 = vsyncpa [#allocation4], 0  ;;  %s152_s9 = smov [#allocation2]   ;;  %s104_s13 = scalar_lea.hbm %s202_s0, 128 }
   0x2   :  { %s15_s10 = sshll.u32 %s152_s9, 4  ;;  %p105_p0 = scmp.ne.s32.totalorder %s202_s0, %s104_s13  ;;  %s16_s10 = int_to_ptr.vmem [resolvable:$true] %s15_s10 }
   0x3   :  { %p108_p1 = scmp.lt.u32.totalorder %s104_s13, %s202_s0 }
   0x5   :  { %p110_p2 = pnand %p108_p1, %p105_p0 }
   0x7   :  { %113 = shalt.err (!%p110_p2)
}
   0x8   :  { %s114_s18 = scalar_lea.vmem %s16_s10, 128  ;;  %p119_p4 = scmp.lt.s32.totalorder %s16_s10, %s16_s10 }
   0x9   :  { %p115_p3 = scmp.ne.s32.totalorder %s16_s10, %s114_s18  ;;  %p120_p5 = scmp.lt.s32.totalorder %s114_s18, %s114_s18 }
   0xb   :  { %p121_p6 = por %p120_p5, %p119_p4 }
   0xd   :  { %p122_p7 = pnand %p121_p6, %p115_p3 }
   0xf   :  { %125 = shalt.err (!%p122_p7)
}
  0x10   :  { %18 = dma.hbm_to_vmem [thread:$0]  %s202_s0, 128, %s16_s10, [#allocation3]  }
  0x11   :  { %148 = dma.done.wait [#allocation3], 128  }
  0x12   :  { %149 = vsyncadd [#allocation3], 4294967168  ;;  %vm25_vm0 = vcmask 126976   ;;  %v24_v0 = vld [vmem:[#allocation2] sm:$0x1f]  ;;  %v48_v5 = vlaneseq  ;;  %vm67_vm3 = vcmask 122880  }
  0x13   :  { %v26_v1 = vsel %vm25_vm0, %v24_v0, -inf  ;;  %v45_v12 = vld [vmem:[%s203_s1] sm:$0x1]  ;;  %v46_v33 = vld [vmem:[%s203_s1 + $0x1] sm:$0x1]  ;;  %s153_s24 = smov [#allocation5]  }
  0x14   :  { %v27_v2 = vrot.slane %v26_v1, 4  ;;  %v49_v8 = vshrl.u32 %v48_v5, 7  ;;  %vm64_vm2 = vcmp.ne.s32.totalorder %v45_v12, 4294967196  ;;  %s87_s25 = sshll.u32 %s153_s24, 4  ;;  %vm79_vm4 = vcmask 0   ;;  %s88_s25 = int_to_ptr.vmem [resolvable:$true] %s87_s25 }
  0x15   :  { %s126_s1 = scalar_lea.vmem %s88_s25, 16  ;;  %s130_s27 = scalar_lea.vmem %s88_s25, 32 }
  0x16   :  { %v28_v3 = vmax.f32 %v26_v1, %v27_v2  ;;  %v52_v11 = vsub.s32 0, %v49_v8  ;;  %p127_p8 = scmp.ne.s32.totalorder %s88_s25, %s126_s1  ;;  %p131_p9 = scmp.lt.s32.totalorder %s88_s25, %s88_s25 }
  0x17   :  { %p132_p10 = scmp.lt.s32.totalorder %s130_s27, %s126_s1 }
  0x18   :  { %v29_v4 = vrot.slane %v28_v3, 2  ;;  %v53_v14 = vrot.slane %v45_v12, %v52_v11 }
  0x19   :  { %p133_p11 = por %p132_p10, %p131_p9 }
  0x1a   :  { %v30_v6 = vmax.f32 %v28_v3, %v29_v4  ;;  %vm54_vm1 = vcmp.eq.s32.totalorder %v49_v8, %v53_v14 }
  0x1b   :  { %p134_p12 = pnand %p133_p11, %p127_p8 }
  0x1c   :  { %v31_v7 = vrot.slane %v30_v6, 1 }
  0x1e   :  { %v32_v9 = vmax.f32 %v30_v6, %v31_v7 }
  0x20   :  { %v33_v10 = vsub.f32 %v24_v0, %v32_v9 }
  0x22   :  { %v34_v13 = vmul.f32 1.442695, %v33_v10  ;;  %v55_v15 = vsel %vm54_vm1, %v33_v10, 0.0 }
  0x23   :  { %v56_v17 = vsel %vm25_vm0, %v55_v15, 0.0 }
  0x24   :  { %100 = vpow2.f32 %v34_v13  ;;  %v57_v20 = vrot.slane %v56_v17, 4 }
  0x26   :  { %v58_v23 = vadd.f32 %v57_v20, %v56_v17 }
  0x28   :  { %v59_v26 = vrot.slane %v58_v23, 2 }
  0x2a   :  { %v60_v28 = vadd.f32 %v59_v26, %v58_v23 }
  0x2c   :  { %v61_v29 = vrot.slane %v60_v28, 1 }
  0x2e   :  { %v101_v16 = vpop.eup %100  ;;  %v62_v30 = vadd.f32 %v61_v29, %v60_v28 }
  0x2f   :  { %v36_v18 = vsel %vm25_vm0, %v101_v16, 0.0 }
  0x30   :  { %v37_v19 = vrot.slane %v36_v18, 4 }
  0x32   :  { %v38_v21 = vadd.f32 %v37_v19, %v36_v18 }
  0x34   :  { %v39_v22 = vrot.slane %v38_v21, 2 }
  0x36   :  { %v40_v24 = vadd.f32 %v39_v22, %v38_v21 }
  0x38   :  { %v41_v25 = vrot.slane %v40_v24, 1 }
  0x3a   :  { %v42_v27 = vadd.f32 %v41_v25, %v40_v24 }
  0x3c   :  { %102 = vlog2.f32 %v42_v27 }
  0x46   :  { %v103_v31 = vpop.eup %102 }
  0x47   :  { %v44_v32 = vmul.f32 0.6931472, %v103_v31 }
  0x49   :  { %v63_v34 = vsub.f32 %v44_v32, %v62_v30 }
  0x4b   :  { %v65_v35 = vmul.f32 %v63_v34, %v46_v33 }
  0x4d   :  { %v66_v36 = vsel %vm64_vm2, %v65_v35, 0.0 }
  0x4e   :  { %v68_v37 = vsel %vm67_vm3, %v66_v36, 0.0 }
  0x4f   :  { %69 = vadd.xlane.f32.xlu0 %v68_v37 }
  0xdc   :  { %v70_v38 = vpop.xlane.xlu0 %69 }
  0xdd   :  { %v71_v39 = vrot.slane %v70_v38, 4 }
  0xdf   :  { %v72_v40 = vadd.f32 %v71_v39, %v70_v38 }
  0xe1   :  { %v73_v41 = vrot.slane %v72_v40, 2 }
  0xe3   :  { %v74_v42 = vadd.f32 %v73_v41, %v72_v40 }
  0xe5   :  { %v75_v43 = vrot.slane %v74_v42, 1 }
  0xe7   :  { %v76_v44 = vadd.f32 %v75_v43, %v74_v42 }
  0xe9   :  { %96 = vpush %v76_v44 }
 0x11a   :  { %s97_s26 = spop %96 }
 0x11b   :  { %v78_v45 = vstv %s97_s26 }
 0x11c   :  { %80 = vst.msk [vmem:[#allocation5] sm:$0x1] %vm79_vm4, %v78_v45 }
 0x11d   :  { %137 = shalt.err (!%p134_p12)
}
 0x11e   :  { %s138_s30 = scalar_lea.hbm %s204_s2, 16 }
 0x11f   :  { %p139_p13 = scmp.ne.s32.totalorder %s204_s2, %s138_s30  ;;  %p142_p0 = scmp.lt.u32.totalorder %s138_s30, %s204_s2 }
 0x121   :  { %p144_p1 = pnand %p142_p0, %p139_p13 }
 0x123   :  { %147 = shalt.err (!%p144_p1)
}
 0x124   :  { %90 = dma.vmem_to_hbm [thread:$0]  %s88_s25, 16, %s204_s2, [#allocation4]  }
 0x125   :  { %150 = dma.done.wait [#allocation4], 16  }
 0x126   :  { %151 = vsyncadd [#allocation4], 4294967280 }
 0x127   :  { %94 = vsyncpa [#allocation3], 1 }
 0x128   :  { %95 = vsyncpa [#allocation4], 1 }

</bundles_post_ra>
